<compile_context>
chip_gen: v6e
topology: v6e:2x2x1
jax: 0.10.0
libtpu: 0.0.40
codegen_flags: <defaults>
</compile_context>

<pallas_src>
import math
import jax
import jax.numpy as jnp
from jax.experimental import pallas as pl
from jax.experimental.pallas import tpu as pltpu


def se_kernel(x_ref, w1_ref, b1_ref, w2_ref, b2_ref, o_ref):
    # One batch element per grid step. Block layout: (1, C, H*W); spatial on lanes.
    x = x_ref[0].astype(jnp.float32)                       # (C, HW)
    inv_hw = 1.0 / x.shape[-1]                             # static Python float

    # Squeeze: global average pool over spatial -> channel column vector.
    pooled = jnp.sum(x, axis=-1, keepdims=True) * inv_hw   # (C, 1)

    # Excite: two 1x1 convs on the pooled vector == two mat-vecs (channels on sublanes,
    # so no transpose of the pooled vector is ever needed).
    h = jnp.dot(w1_ref[...], pooled,
                preferred_element_type=jnp.float32) + b1_ref[...]   # (SE_W, 1)
    h = h * jax.nn.sigmoid(h)                              # Swish / SiLU
    s = jnp.dot(w2_ref[...], h,
                preferred_element_type=jnp.float32) + b2_ref[...]   # (C, 1)
    s = jax.nn.sigmoid(s)                                  # excitation gate in [0, 1]

    # Scale: channel-wise gate broadcast across the lane (spatial) dimension.
    o_ref[0] = (x * s).astype(o_ref.dtype)                 # (C, HW)


def se_block(x, w1, b1, w2, b2):
    """x: (B, C, H, W); w1: (SE_W, C); b1: (SE_W,); w2: (C, SE_W); b2: (C,)."""
    B, C, H, W = x.shape
    SE_W = w1.shape[0]
    assert w1.shape == (SE_W, C) and w2.shape == (C, SE_W)
    HW = H * W

    x3 = x.reshape(B, C, HW)          # free reshape (row-major contiguous)
    b1c = b1.reshape(SE_W, 1)
    b2c = b2.reshape(C, 1)

    out = pl.pallas_call(
        se_kernel,
        out_shape=jax.ShapeDtypeStruct((B, C, HW), x.dtype),
        grid_spec=pltpu.PrefetchScalarGridSpec(
            num_scalar_prefetch=0,
            grid=(B,),
            in_specs=[
                # One batch element per step; double-buffered by the pipeline.
                pl.BlockSpec((1, C, HW), lambda b: (b, 0, 0)),
                # Tiny SE weights/biases: constant block index -> VMEM-resident.
                pl.BlockSpec((SE_W, C), lambda b: (0, 0)),
                pl.BlockSpec((SE_W, 1), lambda b: (0, 0)),
                pl.BlockSpec((C, SE_W), lambda b: (0, 0)),
                pl.BlockSpec((C, 1), lambda b: (0, 0)),
            ],
            out_specs=pl.BlockSpec((1, C, HW), lambda b: (b, 0, 0)),
        ),
        compiler_params=pltpu.CompilerParams(
            # Batch axis is independent -> shard across the 2 TCs on v7x.
            dimension_semantics=("parallel",)),
    )(x3, w1, b1c, w2, b2c)

    return out.reshape(B, C, H, W)


if __name__ == "__main__":
    key = jax.random.PRNGKey(0)
    k_x, k_w1, k_b1, k_w2, k_b2 = jax.random.split(key, 5)

    # Small shapes consistent with the module: NCHW input, 1x1-conv bottleneck.
    batch, in_w, se_w, H, W = 2, 16, 4, 16, 16

    # Deterministic conv-like uniform init (exact distribution is irrelevant here).
    bound1 = 1.0 / math.sqrt(in_w)
    bound2 = 1.0 / math.sqrt(se_w)
    w1 = jax.random.uniform(k_w1, (se_w, in_w), jnp.float32, -bound1, bound1)
    b1 = jax.random.uniform(k_b1, (se_w,), jnp.float32, -bound1, bound1)
    w2 = jax.random.uniform(k_w2, (in_w, se_w), jnp.float32, -bound2, bound2)
    b2 = jax.random.uniform(k_b2, (in_w,), jnp.float32, -bound2, bound2)

    x = jax.random.normal(k_x, (batch, in_w, H, W), jnp.float32)

    y = se_block(x, w1, b1, w2, b2)
    y = jax.block_until_ready(y)

    # Pure-JAX reference: SE forward with Swish (the module's documented act_fun).
    pooled = x.mean(axis=(2, 3))                                  # (B, C)
    h = pooled @ w1.T + b1
    h = h * jax.nn.sigmoid(h)                                     # Swish
    s = jax.nn.sigmoid(h @ w2.T + b2)                             # (B, C)
    y_ref = x * s[:, :, None, None]

    assert y.shape == (batch, in_w, H, W)
    assert jnp.allclose(y, y_ref, atol=2e-5, rtol=1e-4), "mismatch vs reference"

    print("KERNEL_OK")
</pallas_src>

<mosaic_0001>
module attributes {stable_mosaic.version = 11 : i64} {
  func.func @se_kernel(%arg0: i32, %arg1: memref<1x16x256xf32, #tpu.memory_space<vmem>>, %arg2: memref<4x16xf32, #tpu.memory_space<vmem>>, %arg3: memref<4x1xf32, #tpu.memory_space<vmem>>, %arg4: memref<16x4xf32, #tpu.memory_space<vmem>>, %arg5: memref<16x1xf32, #tpu.memory_space<vmem>>, %arg6: memref<1x16x256xf32, #tpu.memory_space<vmem>>) attributes {dimension_semantics = [#tpu.dimension_semantics<parallel>], iteration_bounds = array<i64: 2>, scalar_prefetch = 0 : i64, scratch_operands = 0 : i64, tpu.core_type = #tpu.core_type<tc>, window_params = [{transform_indices = @transform_0, window_bounds = array<i64: 1, 16, 256>}, {pipeline_mode = #tpu.pipeline_mode<synchronous>, transform_indices = @transform_1, window_bounds = array<i64: 4, 16>}, {pipeline_mode = #tpu.pipeline_mode<synchronous>, transform_indices = @transform_2, window_bounds = array<i64: 4, 1>}, {pipeline_mode = #tpu.pipeline_mode<synchronous>, transform_indices = @transform_3, window_bounds = array<i64: 16, 4>}, {pipeline_mode = #tpu.pipeline_mode<synchronous>, transform_indices = @transform_4, window_bounds = array<i64: 16, 1>}, {transform_indices = @transform_5, window_bounds = array<i64: 1, 16, 256>}]} {
    %c0 = arith.constant 0 : index
    %c0_0 = arith.constant 0 : index
    %c0_1 = arith.constant 0 : index
    %0 = vector.load %arg1[%c0, %c0_0, %c0_1] : memref<1x16x256xf32, #tpu.memory_space<vmem>>, vector<1x16x256xf32>
    %1 = vector.shape_cast %0 : vector<1x16x256xf32> to vector<16x256xf32>
    %cst = arith.constant dense<0.000000e+00> : vector<16xf32>
    %2 = vector.multi_reduction <add>, %1, %cst [1] : vector<16x256xf32> to vector<16xf32>
    %3 = vector.shape_cast %2 : vector<16xf32> to vector<16x1xf32>
    %cst_2 = arith.constant 3.906250e-03 : f32
    %4 = vector.broadcast %cst_2 : f32 to vector<16x1xf32>
    %5 = arith.mulf %3, %4 : vector<16x1xf32>
    %c0_3 = arith.constant 0 : index
    %c0_4 = arith.constant 0 : index
    %6 = vector.load %arg2[%c0_3, %c0_4] : memref<4x16xf32, #tpu.memory_space<vmem>>, vector<4x16xf32>
    %cst_5 = arith.constant dense<0.000000e+00> : vector<4x1xf32>
    %7 = tpu.matmul %6, %5, %cst_5 {dimension_numbers = #tpu.dot_dimension_numbers<[1], [0], [0], [1], [0, 0, 1, 1], [], []>} : vector<4x16xf32>, vector<16x1xf32>, vector<4x1xf32> -> vector<4x1xf32>
    %c0_6 = arith.constant 0 : index
    %c0_7 = arith.constant 0 : index
    %8 = vector.load %arg3[%c0_6, %c0_7] : memref<4x1xf32, #tpu.memory_space<vmem>>, vector<4x1xf32>
    %9 = arith.addf %7, %8 : vector<4x1xf32>
    %10 = arith.negf %9 : vector<4x1xf32>
    %11 = math.exp %10 : vector<4x1xf32>
    %cst_8 = arith.constant 1.000000e+00 : f32
    %12 = vector.broadcast %cst_8 : f32 to vector<4x1xf32>
    %13 = arith.addf %12, %11 : vector<4x1xf32>
    %14 = arith.divf %12, %13 : vector<4x1xf32>
    %15 = arith.mulf %9, %14 : vector<4x1xf32>
    %c0_9 = arith.constant 0 : index
    %c0_10 = arith.constant 0 : index
    %16 = vector.load %arg4[%c0_9, %c0_10] : memref<16x4xf32, #tpu.memory_space<vmem>>, vector<16x4xf32>
    %cst_11 = arith.constant dense<0.000000e+00> : vector<16x1xf32>
    %17 = tpu.matmul %16, %15, %cst_11 {dimension_numbers = #tpu.dot_dimension_numbers<[1], [0], [0], [1], [0, 0, 1, 1], [], []>} : vector<16x4xf32>, vector<4x1xf32>, vector<16x1xf32> -> vector<16x1xf32>
    %c0_12 = arith.constant 0 : index
    %c0_13 = arith.constant 0 : index
    %18 = vector.load %arg5[%c0_12, %c0_13] : memref<16x1xf32, #tpu.memory_space<vmem>>, vector<16x1xf32>
    %19 = arith.addf %17, %18 : vector<16x1xf32>
    %20 = arith.negf %19 : vector<16x1xf32>
    %21 = math.exp %20 : vector<16x1xf32>
    %cst_14 = arith.constant 1.000000e+00 : f32
    %22 = vector.broadcast %cst_14 : f32 to vector<16x1xf32>
    %23 = arith.addf %22, %21 : vector<16x1xf32>
    %24 = arith.divf %22, %23 : vector<16x1xf32>
    %25 = vector.broadcast %24 : vector<16x1xf32> to vector<16x256xf32>
    %26 = arith.mulf %1, %25 : vector<16x256xf32>
    %c0_15 = arith.constant 0 : index
    %c0_16 = arith.constant 0 : index
    %c0_17 = arith.constant 0 : index
    %27 = vector.load %arg6[%c0_15, %c0_16, %c0_17] : memref<1x16x256xf32, #tpu.memory_space<vmem>>, vector<1x16x256xf32>
    %28 = vector.shape_cast %27 : vector<1x16x256xf32> to vector<16x256xf32>
    %29 = vector.shape_cast %26 : vector<16x256xf32> to vector<1x16x256xf32>
    tpu.vector_store %arg6[%c0_15, %c0_16, %c0_17], %29 {strides = array<i32>} : memref<1x16x256xf32, #tpu.memory_space<vmem>>, vector<1x16x256xf32>,
    return
  }
  func.func @transform_0(%arg0: i32) -> (i32, i32, i32) {
    %c0_i32 = arith.constant 0 : i32
    %c0_i32_0 = arith.constant 0 : i32
    %c0_i32_1 = arith.constant 0 : i32
    return %arg0, %c0_i32, %c0_i32_0 : i32, i32, i32
  }
  func.func @transform_1(%arg0: i32) -> (i32, i32) {
    %c0_i32 = arith.constant 0 : i32
    %c0_i32_0 = arith.constant 0 : i32
    %c0_i32_1 = arith.constant 0 : i32
    return %c0_i32, %c0_i32_0 : i32, i32
  }
  func.func @transform_2(%arg0: i32) -> (i32, i32) {
    %c0_i32 = arith.constant 0 : i32
    %c0_i32_0 = arith.constant 0 : i32
    %c0_i32_1 = arith.constant 0 : i32
    return %c0_i32, %c0_i32_0 : i32, i32
  }
  func.func @transform_3(%arg0: i32) -> (i32, i32) {
    %c0_i32 = arith.constant 0 : i32
    %c0_i32_0 = arith.constant 0 : i32
    %c0_i32_1 = arith.constant 0 : i32
    return %c0_i32, %c0_i32_0 : i32, i32
  }
  func.func @transform_4(%arg0: i32) -> (i32, i32) {
    %c0_i32 = arith.constant 0 : i32
    %c0_i32_0 = arith.constant 0 : i32
    %c0_i32_1 = arith.constant 0 : i32
    return %c0_i32, %c0_i32_0 : i32, i32
  }
  func.func @transform_5(%arg0: i32) -> (i32, i32, i32) {
    %c0_i32 = arith.constant 0 : i32
    %c0_i32_0 = arith.constant 0 : i32
    %c0_i32_1 = arith.constant 0 : i32
    return %arg0, %c0_i32, %c0_i32_0 : i32, i32, i32
  }
}

</mosaic_0001>

<bundles_post_ra>
// kernel: tpu_custom_call.1
= control target key start
LH: loop header
LB: loop body
LE: loop exit
PB: predicated region body
PF: predicated region fallthrough
CT: control target
= control target key end

     0   :  { %10 = vsyncpa [#allocation3], 0  ;;  %s980_s0 = inlined_call_operand.hbm [shape: f32[2,16,256], index: 0, kind: input, shape index: {}]   ;;  %s981_s1 = inlined_call_operand.vmem [shape: f32[4,16], index: 1, kind: input, shape index: {}]   ;;  %s982_s2 = inlined_call_operand.vmem [shape: f32[4,1], index: 2, kind: input, shape index: {}]   ;;  %s983_s3 = inlined_call_operand.vmem [shape: f32[16,4], index: 3, kind: input, shape index: {}]   ;;  %s984_s4 = inlined_call_operand.vmem [shape: f32[16,1], index: 4, kind: input, shape index: {}]   ;;  %s985_s5 = inlined_call_operand.hbm [shape: f32[2,16,256], index: 5, kind: output, shape index: {}]  }
   0x1   :  { %12 = vsyncpa [#allocation3 + $0x1], 0 }
   0x2   :  { %13 = vsyncpa [#allocation4], 0 }
   0x3   :  { %15 = vsyncpa [#allocation4 + $0x1], 0  ;;  %s786_s18 = smov 0   ;;  %s788_s19 = smov 0  }
   0x4   :  { %s790_s20 = smov 0   ;;  %s792_s21 = smov 0  }
   0x5 LB: > { %s807_s22 = sadd.s32 4294967295, %s745_s21   ;;  %s545_s23 = sadd.s32 4294967294, %s745_s21   ;;  %s745_s21 = sphi %s792_s21, %s1000_s21   ;;  %s741_s20 = sphi %s790_s20, %s999_s20   ;;  %s737_s19 = sphi %s788_s19, %s998_s19   ;;  %s733_s18 = sphi %s786_s18, %s997_s18  }
   0x6   : > { %s811_s24 = sadd.s32 1, %s745_s21   ;;  %s28_s25 = sadd.s32 1, %s741_s20 }
   0x7   : > { %s25_s26 = ssub.s32 %s745_s21, %s811_s24  ;;  %p35_p0 = scmp.ne.s32.totalorder %s741_s20, %s737_s19 }
   0x8   : > { %p26_p1 = scmp.eq.s32.totalorder %s25_s26, 0  ;;  %p36_p2 = scmp.eq.s32.totalorder %s745_s21, 0 }
   0x9   : > { %p41_p3 = scmp.ne.s32.totalorder %s737_s19, %s733_s18  ;;  %p42_p4 = scmp.eq.s32.totalorder %s807_s22, 0 }
   0xa   : > { %s823_s27 = scalar_select %p26_p1, %s741_s20, %s28_s25  }
   0xb   : > { %p825_p5 = por %p36_p2, %p35_p0  ;;  %p829_p6 = por %p42_p4, %p41_p3 }
   0xc   : > { %p149_p7 = scmp.eq.s32.totalorder %s807_s22, 1  ;;  %p155_p8 = scmp.eq.s32.totalorder %s545_s23, 1 }
   0xd   : > { %s989_s29 = scalar_select %p829_p6, 1, 0 }
   0xe   : > { %p598_p10 = scmp.lt.s32.totalorder %s745_s21, 2  ;;  %p836_p11 = por %p149_p7, %p35_p0 }
   0xf   : > { %p840_p12 = por %p155_p8, %p41_p3  ;;  %s187_s7 = sand.u32 1, %s741_s20  }
  0x10   : > { %s990_s30 = scalar_select %p836_p11, 1, 0 }
  0x11   : > { %s991_s6 = scalar_select %p840_p12, 1, 0 }
  0x12   : > { %s566_s8 = sshll.u32 %s745_s21, 9  ;;  %s548_s9 = sshll.u32 %s187_s7, 5 }
  0x13   : > { %s849_s12 = scalar_lea.hbm %s980_s0, %s566_s8  ;;  %s191_s13 = scalar_lea.vmem [#allocation2], %s548_s9 }
  0x14   : > { %s198_s14 = sshll.u32 %s191_s13, 4  ;;  %p853_p13 = pnand %p598_p10, %p825_p5  ;;  %s857_s14 = int_to_ptr.vmem [resolvable:$true] %s198_s14 }
  0x15   : > { %s859_s16 = scalar_lea.sflag [#allocation3], %s187_s7  ;;  %s653_s17 = scalar_lea.hbm %s849_s12, 512 }
  0x16   : > { %p654_p0 = scmp.ne.s32.totalorder %s849_s12, %s653_s17  ;;  %p655_p1 = pneg %p853_p13 }
  0x17   : > { %s658_s26 = scalar_lea.hbm %s980_s0, 1024  ;;  %p659_p4 = scmp.lt.s32.totalorder %s849_s12, %s980_s0 }
  0x18   : > { %p656_p2 = pnand %p655_p1, %p654_p0  ;;  %p660_p5 = scmp.lt.s32.totalorder %s658_s26, %s653_s17 }
  0x1a   : > { %p657_p3 = pneg %p656_p2  ;;  %p661_p7 = por %p660_p5, %p659_p4 }
  0x1c   : > { %p662_p8 = pnand %p661_p7, %p657_p3 }
  0x1e   : > { %665 = shalt.err (!%p662_p8)
}
  0x1f   : > { %s666_s7 = scalar_lea.vmem %s857_s14, 512  ;;  %s747_s9 = smov [#allocation2]  }
  0x20   : > { %p667_p10 = scmp.ne.s32.totalorder %s857_s14, %s666_s7  ;;  %s671_s10 = sshll.u32 %s747_s9, 4  ;;  %s672_s10 = int_to_ptr.vmem [resolvable:$false] %s671_s10 }
  0x21   : > { %s673_s11 = scalar_lea.vmem %s672_s10, 1024  ;;  %p674_p2 = scmp.lt.s32.totalorder %s857_s14, %s672_s10 }
  0x22   : > { %p669_p9 = pnand %p667_p10, %p655_p1  ;;  %p675_p12 = scmp.lt.s32.totalorder %s673_s11, %s666_s7 }
  0x24   : > { %p670_p0 = pneg %p669_p9  ;;  %p676_p11 = por %p675_p12, %p674_p2 }
  0x26   : > { %p677_p6 = pnand %p676_p11, %p670_p0 }
  0x28   : > { %680 = shalt.err (!%p677_p6)
}
  0x29   : > { %s748_s13 = smov 256   ;;  %s749_s17 = smov 16  }
  0x2a   : > { %593 = dma.hbm_to_vmem [thread:$0]  (!%p853_p13), %s849_s12, 512, %s857_s14, %s859_s16, %s748_s13, %s748_s13, %s749_s17  }
  0x2b   : > { %p551_p9 = scmp.ge.s32.totalorder %s745_s21, 1  ;;  %p206_p1 = scmp.lt.s32.totalorder %s745_s21, 3 }
  0x2d   : > { %p207_p3 = pnand %p551_p9, %p206_p1 }
  0x2e   : > { %s883_s23 = sand.u32 (!%p207_p3), 1, %s737_s19   ;;  %p993_p6 = scmp.ne.s32.totalorder (!%p207_p3), %s989_s29, 0 }
  0x2f   : > { %210 = sbr.rel (%p207_p3) target bundleno = 805 (0x325), region = 40  ;;  %s552_s25 = sshll.u32 (!%p207_p3), %s883_s23, 5 }
  0x30   : > { %s213_s26 = scalar_lea.sflag (!%p207_p3), [#allocation3], %s883_s23  ;;  %s216_s28 = scalar_lea.vmem (!%p207_p3), [#allocation2], %s552_s25 }
  0x34   : > { %724 = dma.done.wait (%p993_p6), %s213_s26, 512  }
  0x35   : > { %726 = vsyncadd (%p993_p6), %s213_s26, 4294966784  ;;  %v893_v0 = vld [vmem:[%s216_s28 + $0x10] sm:$0xff]  ;;  %v895_v1 = vld [vmem:[%s216_s28 + $0x18] sm:$0xff]  ;;  %v750_v6 = vmov 0.0   ;;  %vm751_vm0 = vmmov 0   ;;  %vm257_vm1 = vcmask 130048  }
  0x36   : > { %v897_v2 = vld [vmem:[%s216_s28] sm:$0xff]  ;;  %v250_v3 = vadd.f32 %v895_v1, %v893_v0  ;;  %v901_v4 = vld [vmem:[%s216_s28 + $0x8] sm:$0xff]  ;;  %574 = vmatprep.subr.mxu0 %v750_v6  ;;  %578 = vmatprep.mubr.msk.f32.mxu0 %vm751_vm0, %v750_v6  ;;  %vm342_vm2 = vcmask 31744   ;;  %vm349_vm3 = vcmask 1043456   ;;  %v752_v23 = vmov 0   ;;  %s242_s26 = scalar_lea.vmem [#allocation5], %s552_s25 }
  0x37   : > { %v247_v5 = vadd.f32 %v901_v4, %v897_v2  ;;  %v255_v11 = vld [vmem:[%s981_s1] sm:$0xf]  ;;  %v339_v22 = vld [vmem:[%s983_s3 + $0x8] sm:$0xff]  ;;  %639 = vset.pattern.permute.xlu1 %v752_v23  ;;  %640 = vset.pattern.permute.xlu0 %v752_v23  ;;  %s472_s28 = sshll.u32 %s242_s26, 4  ;;  %s567_s29 = sshll.u32 %s807_s22, 9  ;;  %s930_s28 = int_to_ptr.vmem [resolvable:$true] %s472_s28 }
  0x38   : > { %251 = vadd.xlane.f32.xlu0 %v250_v3  ;;  %v338_v12 = vld [vmem:[%s983_s3] sm:$0xff]  ;;  %v341_v24 = vld [vmem:[%s984_s4 + $0x8] sm:$0xff]  ;;  %s935_s25 = scalar_lea.hbm %s985_s5, %s567_s29  ;;  %s459_s22 = scalar_lea.sflag [#allocation4], %s883_s23 }
  0x39   : > { %583 = vmatprep.mubr.msk.f32.mxu1 %vm342_vm2, %v338_v12  ;;  %v256_v13 = vld [vmem:[%s982_s2] sm:$0xf]  ;;  %s681_s15 = scalar_lea.vmem %s930_s28, 512  ;;  %p994_p12 = scmp.ne.s32.totalorder %s990_s30, 0 }
  0x3a   : > { %v340_v26 = vld [vmem:[%s984_s4] sm:$0xff]  ;;  %p682_p11 = scmp.ne.s32.totalorder %s930_s28, %s681_s15  ;;  %s753_s16 = smov [#allocation5]  }
  0x3b   : > { %s685_s8 = sshll.u32 %s753_s16, 4  ;;  %s686_s8 = int_to_ptr.vmem [resolvable:$false] %s685_s8 }
  0x3c   : > { %248 = vadd.xlane.f32.xlu0 %v247_v5  ;;  %p683_p13 = pnand %p682_p11, %p994_p12  ;;  %s687_s7 = scalar_lea.vmem %s686_s8, 1024 }
  0x3d   : > { %p688_p5 = scmp.lt.s32.totalorder %s930_s28, %s686_s8  ;;  %p689_p7 = scmp.lt.s32.totalorder %s687_s7, %s681_s15 }
  0x3e   : > { %p684_p4 = pneg %p683_p13 }
  0x3f   : > { %p690_p8 = por %p689_p7, %p688_p5 }
  0x41   : > { %p691_p10 = pnand %p690_p8, %p684_p4 }
  0xc1   : > { %v252_v7 = vpop.xlane.xlu0 %251 }
  0xc2   : > { %v254_v8 = vmul.f32 0.00390625, %v252_v7 }
  0xc4   : > { %575 = vmatpush3.msra.mxu0 %v254_v8 }
  0xc5   : > { %v249_v9 = vpop.xlane.xlu0 %248  ;;  %576 = vmatprep.subr.mxu0 %v750_v6 }
  0xc6   : > { %v253_v10 = vmul.f32 0.00390625, %v249_v9 }
  0xc8   : > { %577 = vmatpush3.msra.mxu0 %v253_v10 }
  0xc9   : > { %579 = vmatmul.mubr.msk.f32.vlgmr.msra.gmra.mxu0 %vm257_vm1, %v255_v11 }
 0x189   : > { %v327_v14 = vpop.f32.mrf.mxu0 }
 0x18a   : > { %v328_v15 = vadd.f32 %v327_v14, %v256_v13 }
 0x18b   : > { %v580_v16 = vpop.f32.mrf.mxu0 }
 0x18c   : > { %v555_v17 = vmul.f32 -1.442695, %v328_v15 }
 0x18e   : > { %641 = vpow2.f32 %v555_v17 }
 0x19b   : > { %v642_v18 = vpop.eup %641 }
 0x19c   : > { %v334_v19 = vadd.f32 1.0, %v642_v18 }
 0x19e   : > { %643 = vrcp.f32 %v334_v19 }
 0x1ab   : > { %v644_v20 = vpop.eup %643 }
 0x1ac   : > { %v337_v21 = vmul.f32 %v644_v20, %v328_v15 }
 0x1ae   : > { %581 = vmatprep.subr.msk.mxu1 %vm349_vm3, %v337_v21 }
 0x1af   : > { %582 = vmatpush3.msk.msra.mxu1 %vm349_vm3, %v337_v21 }
 0x1b0   : > { %584 = vmatmul.mubr.msk.f32.vlgmr.msra.gmra.mxu1 %vm342_vm2, %v339_v22 }
 0x270   : > { %v585_v25 = vpop.f32.mrf.mxu1 }
 0x271   : > { %v425_v27 = vadd.f32 %v585_v25, %v341_v24 }
 0x272   : > { %v419_v28 = vpop.f32.mrf.mxu1 }
 0x273   : > { %v560_v29 = vmul.f32 -1.442695, %v425_v27  ;;  %v420_v30 = vadd.f32 %v419_v28, %v340_v26 }
 0x275   : > { %v559_v31 = vmul.f32 -1.442695, %v420_v30  ;;  %645 = vpow2.f32 %v560_v29 }
 0x277   : > { %647 = vpow2.f32 %v559_v31 }
 0x282   : > { %v646_v32 = vpop.eup %645 }
 0x283   : > { %v435_v35 = vadd.f32 1.0, %v646_v32 }
 0x284   : > { %v648_v33 = vpop.eup %647 }
 0x285   : > { %v434_v34 = vadd.f32 1.0, %v648_v33 }
 0x287   : > { %649 = vrcp.f32 %v434_v34 }
 0x288   : > { %651 = vrcp.f32 %v435_v35 }
 0x294   : > { %v650_v36 = vpop.eup %649 }
 0x295   : > { %442 = vperm.xlu1 %639, %v650_v36   ;;  %v652_v37 = vpop.eup %651 }
 0x299   : > { %447 = vperm.xlu1 %639, %v652_v37  }
 0x310   : > { %v443_v38 = vpop.permute.xlu1 %442 }
 0x311   : > { %v450_v39 = vmul.f32 %v443_v38, %v897_v2  ;;  %v451_v40 = vmul.f32 %v443_v38, %v901_v4 }
 0x313   : > { %454 = vst [vmem:[%s242_s26] sm:$0xff] %v450_v39  ;;  %455 = vst [vmem:[%s242_s26 + $0x8] sm:$0xff] %v451_v40 }
 0x314   : > { %v448_v41 = vpop.permute.xlu1 %447 }
 0x315   : > { %v452_v42 = vmul.f32 %v448_v41, %v893_v0  ;;  %v453_v43 = vmul.f32 %v448_v41, %v895_v1 }
 0x317   : > { %456 = vst [vmem:[%s242_s26 + $0x10] sm:$0xff] %v452_v42  ;;  %457 = vst [vmem:[%s242_s26 + $0x18] sm:$0xff] %v453_v43 }
 0x318   : > { %694 = shalt.err (!%p691_p10)
}
 0x319   : > { %s695_s9 = scalar_lea.hbm %s935_s25, 512  ;;  %s699_s13 = scalar_lea.hbm %s985_s5, 1024 }
 0x31a   : > { %p696_p0 = scmp.ne.s32.totalorder %s935_s25, %s695_s9  ;;  %p700_p1 = scmp.lt.s32.totalorder %s935_s25, %s985_s5 }
 0x31b   : > { %p701_p3 = scmp.lt.s32.totalorder %s699_s13, %s695_s9 }
 0x31c   : > { %p697_p2 = pnand %p696_p0, %p994_p12 }
 0x31d   : > { %p702_p6 = por %p701_p3, %p700_p1 }
 0x31e   : > { %p698_p9 = pneg %p697_p2 }
 0x320   : > { %p703_p11 = pnand %p702_p6, %p698_p9 }
 0x322   : > { %706 = shalt.err (!%p703_p11)
}
 0x323   : > { %s754_s29 = smov 256   ;;  %s755_s12 = smov 16  }
 0x324   : > { %588 = dma.vmem_to_hbm [thread:$0]  (%p994_p12), %s930_s28, 512, %s935_s25, %s459_s22, %s754_s29, %s754_s29, %s755_s12  }
 0x325 PF: > { %s487_s14 = sand.u32 1, %s733_s18   ;;  %p995_p13 = scmp.ne.s32.totalorder %s991_s6, 0 }
 0x326   : > { %p996_p4 = scmp.ge.s32.totalorder %s745_s21, 2  ;;  %s488_s15 = scalar_lea.sflag [#allocation4], %s487_s14 }
 0x328   : > { %p595_p5 = pnand %p996_p4, %p995_p13 }
 0x32a   : > { %p596_p7 = pneg %p595_p5 }
 0x32c   : > { %728 = dma.done.wait (%p596_p7), %s488_s15, 512  }
 0x32d   : > { %730 = vsyncadd (%p596_p7), %s488_s15, 4294966784  ;;  %p18_p8 = scmp.ge.s32.totalorder %s811_s24, 4   ;;  %s997_s18 = smov %s737_s19 }
 0x32e   : > { %s998_s19 = smov %s741_s20  ;;  %s999_s20 = smov %s823_s27 }
 0x32f   : > { %s1000_s21 = smov %s811_s24  ;;  %20 = sbr.rel (!%p18_p8) target bundleno = 5 (0x5), region = 85 }
 0x334   :  { %493 = vsyncpa [#allocation3], 1 }
 0x335   :  { %495 = vsyncpa [#allocation3 + $0x1], 1 }
 0x336   :  { %496 = vsyncpa [#allocation4], 1 }
 0x337   :  { %498 = vsyncpa [#allocation4 + $0x1], 1 }

</bundles_post_ra>
